<compile_context>
chip_gen: v7x
topology: tpu7x:2x2x1
jax: 0.10.0
libtpu: 0.0.40
codegen_flags: <defaults>
</compile_context>

<pallas_src>
import functools

import jax
import jax.numpy as jnp
from jax.experimental import pallas as pl
from jax.experimental.pallas import tpu as pltpu

LANE = 128


def _round_up(x, m):
    return (x + m - 1) // m * m


def _pad2(x, rows, cols):
    r, c = x.shape
    return jnp.pad(x, ((0, rows - r), (0, cols - c)))


# ---------------------------------------------------------------------------
# Kernel 1: one SAGE layer, tiled over (dst "parallel") x (src "arbitrary")
# ---------------------------------------------------------------------------
def sage_layer_tiled_kernel(a_ref, hdelta_ref, agg_ref, hdst_ref,
                            wd_ref, wn_ref, b_ref, out_ref, acc_ref,
                            *, apply_relu):
    k = pl.program_id(1)

    @pl.when(k == 0)
    def _init():
        # Fold the agg_HBar_dst add into the accumulator init (no extra pass).
        acc_ref[...] = agg_ref[...]

    # Mean-aggregation of the control-variate residual: acc += A_tile @ hdelta_tile.
    acc_ref[...] += jnp.dot(a_ref[...], hdelta_ref[...],
                            preferred_element_type=jnp.float32)

    @pl.when(k == pl.num_programs(1) - 1)
    def _finalize():
        # Linear(concat([H_dst, h_neigh])) as two MXU dots (no lane-axis concat).
        h = (jnp.dot(hdst_ref[...], wd_ref[...],
                     preferred_element_type=jnp.float32)
             + jnp.dot(acc_ref[...].astype(jnp.bfloat16), wn_ref[...],
                       preferred_element_type=jnp.float32)
             + b_ref[...])
        if apply_relu:
            h = jnp.maximum(h, 0.0)
        out_ref[...] = h


def sage_layer_tiled(a, hdelta_bf, agg, hdst_bf, wd_t, wn_t, b2, *,
                     apply_relu, tm=256, tk=512):
    """Tiled/pipelined single SAGE layer. Returns (n_dst, f_out_padded) f32."""
    n_dst, n_src = a.shape
    fin_p = hdelta_bf.shape[1]
    fout_p = wd_t.shape[1]

    # Sublane-aligned M tile, lane-aligned K (src reduction) tile.
    tm = min(tm, _round_up(n_dst, 8))
    tk = min(tk, _round_up(n_src, LANE))
    n_dst_p = _round_up(n_dst, tm)
    n_src_p = _round_up(n_src, tk)

    a_p = _pad2(a, n_dst_p, n_src_p).astype(jnp.bfloat16)
    # TODO(synk): for sparse sampled blocks replace dense A with a
    # PrefetchScalarGridSpec CSR/row-gather aggregation; and quantize A to fp8
    # (v7x) / int8 + per-row scale (v5e/v6e) to halve the dominant HBM bytes.
    hdelta_p = _pad2(hdelta_bf, n_src_p, fin_p)
    agg_p = _pad2(agg, n_dst_p, fin_p)
    hdst_p = _pad2(hdst_bf, n_dst_p, fin_p)

    grid = (n_dst_p // tm, n_src_p // tk)

    # VMEM budget: double-buffered tiles + resident weights + f32 accumulator.
    blk_bytes = (2 * (tm * tk * 2 + tk * fin_p * 2 + tm * fin_p * 4
                      + tm * fin_p * 2 + tm * fout_p * 4)
                 + 2 * (2 * fin_p * fout_p * 2 + fout_p * 4)
                 + tm * fin_p * 4)
    vmem_limit = int(min(max(4 * blk_bytes, 32 * 1024 * 1024),
                         64 * 1024 * 1024))   # stays within v7x 64 MiB physical

    cost = pl.CostEstimate(
        flops=int(2 * n_dst_p * n_src_p * fin_p
                  + 2 * n_dst_p * 2 * fin_p * fout_p),
        transcendentals=0,
        bytes_accessed=int(a_p.size * 2 + hdelta_p.size * 2 + agg_p.size * 4
                           + hdst_p.size * 2 + wd_t.size * 2 + wn_t.size * 2
                           + b2.size * 4 + n_dst_p * fout_p * 4))

    out = pl.pallas_call(
        functools.partial(sage_layer_tiled_kernel, apply_relu=apply_relu),
        out_shape=jax.ShapeDtypeStruct((n_dst_p, fout_p), jnp.float32),
        grid_spec=pltpu.PrefetchScalarGridSpec(
            num_scalar_prefetch=0,
            grid=grid,
            in_specs=[
                pl.BlockSpec((tm, tk), lambda i, k: (i, k)),         # A tile
                pl.BlockSpec((tk, fin_p), lambda i, k: (k, 0)),      # hdelta tile
                pl.BlockSpec((tm, fin_p), lambda i, k: (i, 0)),      # agg_HBar_dst
                pl.BlockSpec((tm, fin_p), lambda i, k: (i, 0)),      # H_dst
                pl.BlockSpec((fin_p, fout_p), lambda i, k: (0, 0)),  # W_dst^T
                pl.BlockSpec((fin_p, fout_p), lambda i, k: (0, 0)),  # W_neigh^T
                pl.BlockSpec((1, fout_p), lambda i, k: (0, 0)),      # bias
            ],
            out_specs=pl.BlockSpec((tm, fout_p), lambda i, k: (i, 0)),
            scratch_shapes=[pltpu.VMEM((tm, fin_p), jnp.float32)]),
        compiler_params=pltpu.CompilerParams(
            dimension_semantics=("parallel", "arbitrary"),
            vmem_limit_bytes=vmem_limit),
        cost_estimate=cost,
    )(a_p, hdelta_p, agg_p, hdst_p, wd_t, wn_t, b2)
    return out[:n_dst]       # drop padded rows; padded (zero) cols feed next layer


# ---------------------------------------------------------------------------
# Kernel 2: remaining small layers, fully VMEM-resident, chained in one call
# ---------------------------------------------------------------------------
def fused_tail_kernel(*refs, relu_flags):
    h_ref = refs[0]
    out_ref = refs[-1]
    layer_refs = refs[1:-1]
    h = h_ref[...]                                          # f32 (n_src, fin_p)
    for l, apply_relu in enumerate(relu_flags):
        a_ref, hist_ref, agg_ref, wd_ref, wn_ref, b_ref = \
            layer_refs[6 * l: 6 * l + 6]
        n_dst = a_ref.shape[0]
        # Control-variate residual in f32; bf16 only on the MXU operands.
        hdelta = (h - hist_ref[...]).astype(jnp.bfloat16)
        h_neigh = agg_ref[...] + jnp.dot(a_ref[...], hdelta,
                                         preferred_element_type=jnp.float32)
        h = (jnp.dot(h[:n_dst].astype(jnp.bfloat16), wd_ref[...],
                     preferred_element_type=jnp.float32)
             + jnp.dot(h_neigh.astype(jnp.bfloat16), wn_ref[...],
                       preferred_element_type=jnp.float32)
             + b_ref[...])
        if apply_relu:
            h = jnp.maximum(h, 0.0)
    out_ref[...] = h


def sage_tail_fused(h, tail_inputs, relu_flags, n_dst_last, fout_last_p):
    vmem = pl.BlockSpec(memory_space=pltpu.MemorySpace.VMEM)
    inputs = [h] + list(tail_inputs)
    total_bytes = sum(int(x.size) * x.dtype.itemsize for x in inputs)
    total_bytes += n_dst_last * fout_last_p * 4
    vmem_limit = int(min(max(2 * total_bytes, 32 * 1024 * 1024),
                         64 * 1024 * 1024))
    return pl.pallas_call(
        functools.partial(fused_tail_kernel, relu_flags=tuple(relu_flags)),
        out_shape=jax.ShapeDtypeStruct((n_dst_last, fout_last_p), jnp.float32),
        in_specs=[vmem] * len(inputs),
        out_specs=vmem,
        compiler_params=pltpu.CompilerParams(vmem_limit_bytes=vmem_limit),
    )(*inputs)


# ---------------------------------------------------------------------------
# One-time parameter prep + full forward
# ---------------------------------------------------------------------------
def prepare_params(params):
    """torch nn.Linear W:(f_out, 2*f_in) -> lane-padded, split, transposed bf16."""
    prepped = []
    for w, b in params:
        w = jnp.asarray(w, jnp.float32)
        b = jnp.asarray(b, jnp.float32)
        f_out, two_fin = w.shape
        f_in = two_fin // 2
        fin_p = _round_up(f_in, LANE)
        fout_p = _round_up(f_out, LANE)
        wd_t = _pad2(w[:, :f_in], fout_p, fin_p).T.astype(jnp.bfloat16)
        wn_t = _pad2(w[:, f_in:], fout_p, fin_p).T.astype(jnp.bfloat16)
        b2 = jnp.pad(b, (0, fout_p - f_out)).reshape(1, fout_p)
        prepped.append((wd_t, wn_t, b2, f_in, f_out))
    return prepped


def validate_blocks(blocks):
    """dst nodes must be a prefix of src nodes in every block (DGL block layout)."""
    for l, blk in enumerate(blocks):
        n_dst, n_src = blk["A"].shape
        assert n_dst <= n_src, f"block {l}: dst ({n_dst}) > src ({n_src})"
        if l + 1 < len(blocks):
            assert blocks[l + 1]["A"].shape[1] == n_dst, \
                f"block {l + 1}: src count must equal block {l} dst count"


def sage_forward_pallas(prepped_params, blocks, features, *, tm0=256, tk0=512):
    """Training-mode SAGE forward: tiled layer 0 + fused small tail layers."""
    n_layers = len(prepped_params)
    validate_blocks(blocks)

    # ----- Layer 0: tiled + pipelined (dominant, HBM-bound aggregation) -----
    wd0, wn0, b0, f_in0, f_out0 = prepped_params[0]
    fin0_p = wd0.shape[0]
    blk0 = blocks[0]
    a0 = jnp.asarray(blk0["A"], jnp.float32)
    n_dst0, n_src0 = a0.shape
    feat_p = _pad2(jnp.asarray(features, jnp.float32), n_src0, fin0_p)
    hist0_p = _pad2(jnp.asarray(blk0["hist"], jnp.float32), n_src0, fin0_p)
    agg0_p = _pad2(jnp.asarray(blk0["agg_hist"], jnp.float32), n_dst0, fin0_p)
    # f32 residual once (halves per-tile DMA bytes vs. shipping H and HBar);
    # bf16 only as the MXU operand.
    hdelta0_bf = (feat_p - hist0_p).astype(jnp.bfloat16)
    hdst0_bf = feat_p[:n_dst0].astype(jnp.bfloat16)

    h = sage_layer_tiled(a0, hdelta0_bf, agg0_p, hdst0_bf, wd0, wn0, b0,
                         apply_relu=(n_layers > 1), tm=tm0, tk=tk0)
    if n_layers == 1:
        return h[:, :f_out0]

    # ----- Layers 1..L-1: small, fused, whole-VMEM -----
    tail_inputs, relu_flags = [], []
    for l in range(1, n_layers):
        wd, wn, b2, f_in, f_out = prepped_params[l]
        fin_p = wd.shape[0]
        blk = blocks[l]
        n_dst, n_src = blk["A"].shape
        a = jnp.asarray(blk["A"], jnp.float32).astype(jnp.bfloat16)
        hist_p = _pad2(jnp.asarray(blk["hist"], jnp.float32), n_src, fin_p)
        agg_p = _pad2(jnp.asarray(blk["agg_hist"], jnp.float32), n_dst, fin_p)
        tail_inputs.extend([a, hist_p, agg_p, wd, wn, b2])
        relu_flags.append(l != n_layers - 1)

    n_dst_last = blocks[-1]["A"].shape[0]
    fout_last_p = prepped_params[-1][0].shape[1]
    n_classes = prepped_params[-1][4]
    out = sage_tail_fused(h, tail_inputs, relu_flags, n_dst_last, fout_last_p)
    return out[:, :n_classes]


# ---------------------------------------------------------------------------
# References
# ---------------------------------------------------------------------------
def sage_forward_ref(params, blocks, features):
    """Pure-f32 JAX reference: exact module semantics."""
    h = features
    for i, ((w, b), blk) in enumerate(zip(params, blocks)):
        n_dst = blk["A"].shape[0]
        h_dst = h[:n_dst]
        hdelta = h - blk["hist"]
        h_neigh = blk["agg_hist"] + blk["A"] @ hdelta
        h = jnp.concatenate([h_dst, h_neigh], axis=1) @ w.T + b
        if i != len(params) - 1:
            h = jax.nn.relu(h)
    return h


def sage_forward_ref_bf16(params, blocks, features):
    """Numerics-matched reference (bf16 MXU operands / f32 accumulation)."""
    h = features
    n_layers = len(params)
    for i, ((w, b), blk) in enumerate(zip(params, blocks)):
        f_in = w.shape[1] // 2
        n_dst = blk["A"].shape[0]
        a_bf = blk["A"].astype(jnp.bfloat16)
        hdelta_bf = (h - blk["hist"]).astype(jnp.bfloat16)
        h_neigh = blk["agg_hist"] + jnp.dot(a_bf, hdelta_bf,
                                            preferred_element_type=jnp.float32)
        wd_t = w[:, :f_in].T.astype(jnp.bfloat16)
        wn_t = w[:, f_in:].T.astype(jnp.bfloat16)
        h = (jnp.dot(h[:n_dst].astype(jnp.bfloat16), wd_t,
                     preferred_element_type=jnp.float32)
             + jnp.dot(h_neigh.astype(jnp.bfloat16), wn_t,
                       preferred_element_type=jnp.float32)
             + b)
        if i != n_layers - 1:
            h = jax.nn.relu(h)
    return h


# ---------------------------------------------------------------------------
# Deterministic parameter / data construction
# ---------------------------------------------------------------------------
def xavier_uniform(key, out_feats, in_feats_x2, gain):
    bound = gain * jnp.sqrt(6.0 / (in_feats_x2 + out_feats))
    return jax.random.uniform(key, (out_feats, in_feats_x2), jnp.float32,
                              -bound, bound)


def make_block(key, n_dst, n_src, f_in):
    """Random block: row-normalized mean-aggregation matrix + histories."""
    k_adj, k_hist, k_agg = jax.random.split(key, 3)
    adj = (jax.random.uniform(k_adj, (n_dst, n_src)) < 0.4).astype(jnp.float32)
    # dst nodes are a prefix of src nodes -> guarantee a self edge (>=1 neighbor)
    adj = adj.at[jnp.arange(n_dst), jnp.arange(n_dst)].set(1.0)
    a = adj / jnp.sum(adj, axis=1, keepdims=True)
    hist = jax.random.normal(k_hist, (n_src, f_in), jnp.float32)
    agg_hist = jax.random.normal(k_agg, (n_dst, f_in), jnp.float32)
    return {"A": a, "hist": hist, "agg_hist": agg_hist}


if __name__ == "__main__":
    in_feats, n_hidden, n_classes, n_layers = 32, 32, 8, 3
    # node counts along the block chain: src of layer l+1 == dst of layer l
    node_counts = [256, 64, 24, 8]   # [src0, dst0=src1, dst1=src2, dst2]

    key = jax.random.PRNGKey(0)
    gain = jnp.sqrt(2.0)             # nn.init.calculate_gain('relu')

    feat_dims = [in_feats] + [n_hidden] * (n_layers - 1) + [n_classes]
    params = []
    for l in range(n_layers):
        key, kw = jax.random.split(key)
        f_in, f_out = feat_dims[l], feat_dims[l + 1]
        w = xavier_uniform(kw, f_out, 2 * f_in, gain)
        b = jnp.zeros((f_out,), jnp.float32)
        params.append((w, b))

    blocks = []
    for l in range(n_layers):
        key, kb = jax.random.split(key)
        blocks.append(make_block(kb, node_counts[l + 1], node_counts[l],
                                 feat_dims[l]))
    key, kx = jax.random.split(key)
    features = jax.random.normal(kx, (node_counts[0], in_feats), jnp.float32)

    prepped = prepare_params(params)
    # Small tiles here so the toy sizes actually exercise the
    # (parallel dst) x (arbitrary src-reduction) grid; the defaults (256, 512)
    # are the MXU-aligned production tiles.
    out = sage_forward_pallas(prepped, blocks, features, tm0=32, tk0=128)
    out = jax.block_until_ready(out)
    assert out.shape == (node_counts[-1], n_classes), out.shape

    # Tight check vs. the numerics-matched (bf16-operand) reference.
    ref_bf16 = sage_forward_ref_bf16(params, blocks, features)
    err_bf16 = float(jnp.max(jnp.abs(out - ref_bf16)))
    assert jnp.allclose(out, ref_bf16, atol=1e-2, rtol=1e-2), err_bf16

    # Loose sanity check vs. the full-f32 reference.
    ref_f32 = sage_forward_ref(params, blocks, features)
    err_f32 = float(jnp.max(jnp.abs(out - ref_f32)))
    assert jnp.allclose(out, ref_f32, atol=2e-1, rtol=1e-1), err_f32

    print("KERNEL_OK")
</pallas_src>

<mosaic_0001>
module attributes {stable_mosaic.version = 11 : i64} {
  func.func @sage_layer_tiled_kernel(%arg0: i32, %arg1: i32, %arg2: memref<32x128xbf16, #tpu.memory_space<vmem>>, %arg3: memref<128x128xbf16, #tpu.memory_space<vmem>>, %arg4: memref<32x128xf32, #tpu.memory_space<vmem>>, %arg5: memref<32x128xbf16, #tpu.memory_space<vmem>>, %arg6: memref<128x128xbf16, #tpu.memory_space<vmem>>, %arg7: memref<128x128xbf16, #tpu.memory_space<vmem>>, %arg8: memref<1x128xf32, #tpu.memory_space<vmem>>, %arg9: memref<32x128xf32, #tpu.memory_space<vmem>>, %arg10: memref<32x128xf32, #tpu.memory_space<vmem>>) attributes {dimension_semantics = [#tpu.dimension_semantics<parallel>, #tpu.dimension_semantics<arbitrary>], iteration_bounds = array<i64: 2, 2>, scalar_prefetch = 0 : i64, scratch_operands = 1 : i64, tpu.core_type = #tpu.core_type<tc>, window_params = [{transform_indices = @transform_0, window_bounds = array<i64: 32, 128>}, {transform_indices = @transform_1, window_bounds = array<i64: 128, 128>}, {transform_indices = @transform_2, window_bounds = array<i64: 32, 128>}, {transform_indices = @transform_3, window_bounds = array<i64: 32, 128>}, {pipeline_mode = #tpu.pipeline_mode<synchronous>, transform_indices = @transform_4, window_bounds = array<i64: 128, 128>}, {pipeline_mode = #tpu.pipeline_mode<synchronous>, transform_indices = @transform_5, window_bounds = array<i64: 128, 128>}, {pipeline_mode = #tpu.pipeline_mode<synchronous>, transform_indices = @transform_6, window_bounds = array<i64: 1, 128>}, {transform_indices = @transform_7, window_bounds = array<i64: 32, 128>}]} {
    %c0_i32 = arith.constant 0 : i32
    %0 = arith.cmpi eq, %arg1, %c0_i32 : i32
    %1 = arith.extui %0 : i1 to i32
    %c0_i32_0 = arith.constant 0 : i32
    %2 = arith.cmpi ne, %1, %c0_i32_0 : i32
    scf.if %2 {
      %c0_9 = arith.constant 0 : index
      %c0_10 = arith.constant 0 : index
      %12 = vector.load %arg4[%c0_9, %c0_10] : memref<32x128xf32, #tpu.memory_space<vmem>>, vector<32x128xf32>
      %c0_11 = arith.constant 0 : index
      %c0_12 = arith.constant 0 : index
      %13 = vector.load %arg10[%c0_11, %c0_12] : memref<32x128xf32, #tpu.memory_space<vmem>>, vector<32x128xf32>
      tpu.vector_store %arg10[%c0_11, %c0_12], %12 {strides = array<i32>} : memref<32x128xf32, #tpu.memory_space<vmem>>, vector<32x128xf32>,
    } else {
    }
    %c0 = arith.constant 0 : index
    %c0_1 = arith.constant 0 : index
    %3 = vector.load %arg10[%c0, %c0_1] : memref<32x128xf32, #tpu.memory_space<vmem>>, vector<32x128xf32>
    %c0_2 = arith.constant 0 : index
    %c0_3 = arith.constant 0 : index
    %4 = vector.load %arg2[%c0_2, %c0_3] : memref<32x128xbf16, #tpu.memory_space<vmem>>, vector<32x128xbf16>
    %c0_4 = arith.constant 0 : index
    %c0_5 = arith.constant 0 : index
    %5 = vector.load %arg3[%c0_4, %c0_5] : memref<128x128xbf16, #tpu.memory_space<vmem>>, vector<128x128xbf16>
    %cst = arith.constant dense<0.000000e+00> : vector<32x128xf32>
    %6 = tpu.matmul %4, %5, %cst {dimension_numbers = #tpu.dot_dimension_numbers<[1], [0], [0], [1], [0, 0, 1, 1], [], []>} : vector<32x128xbf16>, vector<128x128xbf16>, vector<32x128xf32> -> vector<32x128xf32>
    %7 = arith.addf %3, %6 : vector<32x128xf32>
    %c0_6 = arith.constant 0 : index
    %c0_7 = arith.constant 0 : index
    %8 = vector.load %arg10[%c0_6, %c0_7] : memref<32x128xf32, #tpu.memory_space<vmem>>, vector<32x128xf32>
    tpu.vector_store %arg10[%c0_6, %c0_7], %7 {strides = array<i32>} : memref<32x128xf32, #tpu.memory_space<vmem>>, vector<32x128xf32>,
    %c1_i32 = arith.constant 1 : i32
    %9 = arith.cmpi eq, %arg1, %c1_i32 : i32
    %10 = arith.extui %9 : i1 to i32
    %c0_i32_8 = arith.constant 0 : i32
    %11 = arith.cmpi ne, %10, %c0_i32_8 : i32
    scf.if %11 {
      %c0_9 = arith.constant 0 : index
      %c0_10 = arith.constant 0 : index
      %12 = vector.load %arg5[%c0_9, %c0_10] : memref<32x128xbf16, #tpu.memory_space<vmem>>, vector<32x128xbf16>
      %c0_11 = arith.constant 0 : index
      %c0_12 = arith.constant 0 : index
      %13 = vector.load %arg6[%c0_11, %c0_12] : memref<128x128xbf16, #tpu.memory_space<vmem>>, vector<128x128xbf16>
      %cst_13 = arith.constant dense<0.000000e+00> : vector<32x128xf32>
      %14 = tpu.matmul %12, %13, %cst_13 {dimension_numbers = #tpu.dot_dimension_numbers<[1], [0], [0], [1], [0, 0, 1, 1], [], []>} : vector<32x128xbf16>, vector<128x128xbf16>, vector<32x128xf32> -> vector<32x128xf32>
      %c0_14 = arith.constant 0 : index
      %c0_15 = arith.constant 0 : index
      %15 = vector.load %arg10[%c0_14, %c0_15] : memref<32x128xf32, #tpu.memory_space<vmem>>, vector<32x128xf32>
      %16 = arith.truncf %15 : vector<32x128xf32> to vector<32x128xbf16>
      %c0_16 = arith.constant 0 : index
      %c0_17 = arith.constant 0 : index
      %17 = vector.load %arg7[%c0_16, %c0_17] : memref<128x128xbf16, #tpu.memory_space<vmem>>, vector<128x128xbf16>
      %cst_18 = arith.constant dense<0.000000e+00> : vector<32x128xf32>
      %18 = tpu.matmul %16, %17, %cst_18 {dimension_numbers = #tpu.dot_dimension_numbers<[1], [0], [0], [1], [0, 0, 1, 1], [], []>} : vector<32x128xbf16>, vector<128x128xbf16>, vector<32x128xf32> -> vector<32x128xf32>
      %19 = arith.addf %14, %18 : vector<32x128xf32>
      %c0_19 = arith.constant 0 : index
      %c0_20 = arith.constant 0 : index
      %20 = vector.load %arg8[%c0_19, %c0_20] : memref<1x128xf32, #tpu.memory_space<vmem>>, vector<1x128xf32>
      %21 = vector.broadcast %20 : vector<1x128xf32> to vector<32x128xf32>
      %22 = arith.addf %19, %21 : vector<32x128xf32>
      %cst_21 = arith.constant 0.000000e+00 : f32
      %23 = vector.broadcast %cst_21 : f32 to vector<32x128xf32>
      %24 = arith.maximumf %22, %23 : vector<32x128xf32>
      %c0_22 = arith.constant 0 : index
      %c0_23 = arith.constant 0 : index
      %25 = vector.load %arg9[%c0_22, %c0_23] : memref<32x128xf32, #tpu.memory_space<vmem>>, vector<32x128xf32>
      tpu.vector_store %arg9[%c0_22, %c0_23], %24 {strides = array<i32>} : memref<32x128xf32, #tpu.memory_space<vmem>>, vector<32x128xf32>,
    } else {
    }
    return
  }
  func.func @transform_0(%arg0: i32, %arg1: i32) -> (i32, i32) {
    %c0_i32 = arith.constant 0 : i32
    return %arg0, %arg1 : i32, i32
  }
  func.func @transform_1(%arg0: i32, %arg1: i32) -> (i32, i32) {
    %c0_i32 = arith.constant 0 : i32
    %c0_i32_0 = arith.constant 0 : i32
    return %arg1, %c0_i32 : i32, i32
  }
  func.func @transform_2(%arg0: i32, %arg1: i32) -> (i32, i32) {
    %c0_i32 = arith.constant 0 : i32
    %c0_i32_0 = arith.constant 0 : i32
    return %arg0, %c0_i32 : i32, i32
  }
  func.func @transform_3(%arg0: i32, %arg1: i32) -> (i32, i32) {
    %c0_i32 = arith.constant 0 : i32
    %c0_i32_0 = arith.constant 0 : i32
    return %arg0, %c0_i32 : i32, i32
  }
  func.func @transform_4(%arg0: i32, %arg1: i32) -> (i32, i32) {
    %c0_i32 = arith.constant 0 : i32
    %c0_i32_0 = arith.constant 0 : i32
    %c0_i32_1 = arith.constant 0 : i32
    return %c0_i32, %c0_i32_0 : i32, i32
  }
  func.func @transform_5(%arg0: i32, %arg1: i32) -> (i32, i32) {
    %c0_i32 = arith.constant 0 : i32
    %c0_i32_0 = arith.constant 0 : i32
    %c0_i32_1 = arith.constant 0 : i32
    return %c0_i32, %c0_i32_0 : i32, i32
  }
  func.func @transform_6(%arg0: i32, %arg1: i32) -> (i32, i32) {
    %c0_i32 = arith.constant 0 : i32
    %c0_i32_0 = arith.constant 0 : i32
    %c0_i32_1 = arith.constant 0 : i32
    return %c0_i32, %c0_i32_0 : i32, i32
  }
  func.func @transform_7(%arg0: i32, %arg1: i32) -> (i32, i32) {
    %c0_i32 = arith.constant 0 : i32
    %c0_i32_0 = arith.constant 0 : i32
    return %arg0, %c0_i32 : i32, i32
  }
}

</mosaic_0001>

<bundles_post_ra>
// kernel: tpu_custom_call.1
= control target key start
LH: loop header
LB: loop body
LE: loop exit
PB: predicated region body
PF: predicated region fallthrough
CT: control target
= control target key end

     0   :  { %s2388_s0 = inlined_call_operand.hbm [shape: bf16[64,256], index: 0, kind: input, shape index: {}]   ;;  %s2389_s1 = inlined_call_operand.hbm [shape: bf16[256,128], index: 1, kind: input, shape index: {}]   ;;  %s2390_s2 = inlined_call_operand.hbm [shape: f32[64,128], index: 2, kind: input, shape index: {}]   ;;  %s2391_s3 = inlined_call_operand.hbm [shape: bf16[64,128], index: 3, kind: input, shape index: {}]   ;;  %s2392_s4 = inlined_call_operand.hbm [shape: bf16[128,128], index: 4, kind: input, shape index: {}]   ;;  %s2393_s5 = inlined_call_operand.hbm [shape: bf16[128,128], index: 5, kind: input, shape index: {}]   ;;  %s2394_s6 = inlined_call_operand.vmem [shape: f32[1,128], index: 6, kind: input, shape index: {}]   ;;  %s2395_s7 = inlined_call_operand.hbm [shape: f32[64,128], index: 7, kind: output, shape index: {}]  }
   0x1   :  { %2420 = sst [smem:[#allocation34_spill]] %s2388_s0 }
   0x2   :  { %2421 = sst [smem:[#allocation35_spill]] %s2389_s1 }
   0x3   :  { %2422 = sst [smem:[#allocation36_spill]] %s2390_s2 }
   0x4   :  { %2423 = sst [smem:[#allocation37_spill]] %s2392_s4 }
   0x5   :  { %2424 = sst [smem:[#allocation38_spill]] %s2393_s5 }
   0x6   :  { %2425 = sst [smem:[#allocation39_spill]] %s2394_s6 }
   0x7   :  { %2426 = sst [smem:[#allocation40_spill]] %s2395_s7 }
   0x8   :  { %12 = vsyncpa [#allocation4], 0 }
   0x9   :  { %14 = vsyncpa [#allocation4 + $0x1], 0 }
   0xa   :  { %15 = vsyncpa [#allocation7], 0 }
   0xb   :  { %17 = vsyncpa [#allocation7 + $0x1], 0 }
   0xc   :  { %18 = vsyncpa [#allocation10], 0 }
   0xd   :  { %20 = vsyncpa [#allocation10 + $0x1], 0 }
   0xe   :  { %21 = vsyncpa [#allocation13], 0 }
   0xf   :  { %22 = vsyncpa [#allocation5], 0 }
  0x10   :  { %24 = vsyncpa [#allocation5 + $0x1], 0  ;;  %s1829_s24 = smov 0   ;;  %s1831_s25 = smov 0  }
  0x11   :  { %s1833_s26 = smov 0   ;;  %s1835_s27 = smov 0  }
  0x12   :  { %s1837_s28 = smov 0   ;;  %s1839_s29 = smov 0  }
  0x13   :  { %s1841_s30 = smov 0   ;;  %s1843_s8 = smov 0  }
  0x14   :  { %s1845_s9 = smov 0   ;;  %s1847_s10 = smov 0  }
  0x15   :  { %s1849_s11 = smov 0   ;;  %s1851_s12 = smov 0  }
  0x16   :  { %s1853_s13 = smov 0   ;;  %s1855_s14 = smov 0  }
  0x17 LB: > { %2427 = sst [smem:[#allocation22_spill]] %s1738_s28  ;;  %s1900_s15 = sadd.s32 4294967295, %s1774_s14   ;;  %s1774_s14 = sphi %s1855_s14, %s30_s14   ;;  %s1770_s13 = sphi %s1853_s13, %s2506_s13   ;;  %s1766_s12 = sphi %s1851_s12, %s2496_s12   ;;  %s1762_s11 = sphi %s1849_s11, %s2505_s11   ;;  %s1758_s10 = sphi %s1847_s10, %s2504_s10   ;;  %s1754_s9 = sphi %s1845_s9, %s2494_s9   ;;  %s1750_s8 = sphi %s1843_s8, %s2503_s8   ;;  %s1746_s30 = sphi %s1841_s30, %s2502_s30   ;;  %s1742_s29 = sphi %s1839_s29, %s2492_s29   ;;  %s1738_s28 = sphi %s1837_s28, %s2491_s28   ;;  %s1734_s27 = sphi %s1835_s27, %s2490_s27   ;;  %s1730_s26 = sphi %s1833_s26, %s2501_s26   ;;  %s1726_s25 = sphi %s1831_s25, %s2500_s25   ;;  %s1722_s24 = sphi %s1829_s24, %s2499_s24  }
  0x18   : > { %2428 = sst [smem:[#allocation23_spill]] %s1742_s29  ;;  %p1076_p0 = scmp.ge.s32.totalorder %s1774_s14, 1 }
  0x19   : > { %2429 = sst [smem:[#allocation24_spill]] %s1754_s9  ;;  %p2397_p1 = scmp.eq.s32.totalorder %s1900_s15, 0 }
  0x1a   : > { %2430 = sst [smem:[#allocation25_spill]] %s1758_s10  ;;  %p242_p3 = scmp.lt.s32.totalorder %s1774_s14, 5 }
  0x1b   : > { %2431 = sst [smem:[#allocation26_spill]] %s1762_s11  ;;  %s1776_s17 = smov [#allocation11]  }
  0x1c   : > { %2432 = sst [smem:[#allocation27_spill]] %s1766_s12  ;;  %p1906_p4 = pnand %p1076_p0, %p242_p3 }
  0x1d   : > { %s254_s18 = sshll.u32 %s1776_s17, 4  ;;  %s2436_s4 = sld [smem:[#allocation37_spill]]  ;;  %s255_s18 = int_to_ptr.vmem [resolvable:$true] %s254_s18 }
  0x1e   : > { %s2433_s16 = scalar_select %p1906_p4, 1, 0 }
  0x1f   : > { %p1254_p5 = pneg %p1906_p4 }
  0x20   : > { %2434 = sst [smem:[#allocation28_spill]] %s2433_s16 }
  0x21   : > { %p1914_p6 = pnand %p1254_p5, %p2397_p1 }
  0x23   : > { %s1432_s22 = scalar_lea.hbm %s2436_s4, 1024  ;;  %p2410_p8 = pneg %p1914_p6 }
  0x24   : > { %p1433_p7 = scmp.ne.s32.totalorder %s2436_s4, %s1432_s22  ;;  %p1439_p11 = scmp.lt.u32.totalorder %s1432_s22, %s2436_s4 }
  0x26   : > { %p1435_p9 = pnand %p2410_p8, %p1433_p7 }
  0x28   : > { %p1436_p10 = pneg %p1435_p9 }
  0x2a   : > { %p1441_p12 = pnand %p1439_p11, %p1436_p10 }
  0x2c   : > { %1444 = shalt.err (!%p1441_p12)
}
  0x2d   : > { %s1445_s20 = scalar_lea.vmem %s255_s18, 1024  ;;  %p1453_p5 = scmp.lt.s32.totalorder %s255_s18, %s255_s18 }
  0x2e   : > { %p1446_p13 = scmp.ne.s32.totalorder %s255_s18, %s1445_s20  ;;  %p1454_p2 = scmp.lt.s32.totalorder %s1445_s20, %s1445_s20 }
  0x30   : > { %p1448_p0 = pnand %p1446_p13, %p2410_p8  ;;  %p1455_p1 = por %p1454_p2, %p1453_p5 }
  0x32   : > { %p1449_p3 = pneg %p1448_p0 }
  0x34   : > { %p1456_p4 = pnand %p1455_p1, %p1449_p3 }
  0x36   : > { %1459 = shalt.err (!%p1456_p4)
}
  0x37   : > { %s2399_s7 = smov 64   ;;  %s2401_s11 = smov 4  }
  0x38   : > { %1257 = dma.hbm_to_vmem [thread:$0]  (!%p1914_p6), %s2436_s4, 1024, %s255_s18, [#allocation10], %s2399_s7, %s2399_s7, %s2401_s11  }
  0x39   : > { %s39_s23 = sadd.s32 1, %s1766_s12  ;;  %s42_s17 = sadd.s32 1, %s1770_s13 }
  0x3a   : > { %p40_p1 = scmp.ge.s32.totalorder %s39_s23, 2  ;;  %p2409_p2 = scmp.eq.s32.totalorder %s1774_s14, 0 }
  0x3b   : > { %s77_s20 = sadd.s32 1, %s1742_s29  ;;  %p84_p4 = scmp.ne.s32.totalorder %s1742_s29, %s1738_s28 }
  0x3c   : > { %s2508_s23 = smov (%p40_p1, %s39_s23), 0  ;;  %s2510_s17 = smov (!%p40_p1, %s42_s17), %s1770_s13 }
  0x3d   : > { %2437 = sst [smem:[#allocation29_spill]] %s2508_s23  ;;  %s47_s6 = ssub.s32 %s1766_s12, %s2508_s23 }
  0x3e   : > { %p1956_p7 = por %p84_p4, %p2409_p2  ;;  %p44_p9 = scmp.ge.s32.totalorder %s2510_s17, 2 }
  0x3f   : > { %p75_p10 = scmp.eq.s32.totalorder %s47_s6, 0  ;;  %p90_p11 = scmp.ne.s32.totalorder %s1738_s28, %s1734_s27 }
  0x40   : > { %p2408_p12 = scmp.lt.s32.totalorder %s1774_s14, 4  ;;  %s2512_s17 = smov (%p44_p9, %s2510_s17), 0 }
  0x41   : > { %2439 = sst [smem:[#allocation30_spill]] %s2512_s17  ;;  %s1970_s22 = ssub.s32 %s1770_s13, %s2512_s17 }
  0x42   : > { %s1966_s21 = scalar_select %p75_p10, %s1742_s29, %s77_s20  }
  0x43   : > { %p2441_p13 = scmp.eq.s32.totalorder %s1900_s15, 0  ;;  %s48_s11 = sor.u32 %s47_s6, %s1970_s22 }
  0x44   : > { %2440 = sst [smem:[#allocation31_spill]] %s1966_s21  ;;  %p1980_p5 = scmp.eq.s32.totalorder %s48_s11, 0 }
  0x45   : > { %p1974_p0 = por %p90_p11, %p2441_p13  ;;  %s2411_s4 = sand.u32 1, %s1774_s14  }
  0x46   : > { %s2444_s27 = scalar_select %p1980_p5, 1, 0 }
  0x47   : > { %s2442_s7 = scalar_select %p1974_p0, 1, 0 }
  0x48   : > { %s309_s23 = sand.u32 1, %s1742_s29   ;;  %s1138_s20 = sshll.u32 %s1766_s12, 10 }
  0x49   : > { %2443 = sst [smem:[#allocation32_spill]] %s2442_s7  ;;  %s1084_s10 = sshll.u32 %s309_s23, 6 }
  0x4a   : > { %s2445_s1 = sld [smem:[#allocation35_spill]]  ;;  %s311_s7 = scalar_lea.vmem [#allocation6], %s1084_s10 }
  0x4b   : > { %s318_s6 = sshll.u32 %s311_s7, 4  ;;  %p1996_p1 = pnand %p2408_p12, %p1956_p7  ;;  %s2000_s6 = int_to_ptr.vmem [resolvable:$true] %s318_s6 }
  0x4c   : > { %s2004_s23 = scalar_lea.sflag [#allocation7], %s2411_s4 }
  0x4d   : > { %p1462_p9 = pneg %p1996_p1 }
  0x50   : > { %s1990_s28 = scalar_lea.hbm %s2445_s1, %s1138_s20  ;;  %s1465_s18 = scalar_lea.hbm %s2445_s1, 2048 }
  0x51   : > { %s1460_s17 = scalar_lea.hbm %s1990_s28, 1024  ;;  %p1466_p7 = scmp.lt.u32.totalorder %s1990_s28, %s2445_s1 }
  0x52   : > { %p1461_p4 = scmp.ne.s32.totalorder %s1990_s28, %s1460_s17  ;;  %p1467_p13 = scmp.lt.u32.totalorder %s1465_s18, %s1460_s17 }
  0x53   : > { %p1469_p12 = scmp.lt.u32.totalorder %s1460_s17, %s1990_s28 }
  0x54   : > { %p1463_p10 = pnand %p1462_p9, %p1461_p4  ;;  %p1468_p3 = por %p1467_p13, %p1466_p7 }
  0x56   : > { %p1464_p11 = pneg %p1463_p10  ;;  %p1470_p2 = por %p1469_p12, %p1468_p3 }
  0x58   : > { %p1471_p8 = pnand %p1470_p2, %p1464_p11 }
  0x5a   : > { %1474 = shalt.err (!%p1471_p8)
}
  0x5b   : > { %s1475_s4 = scalar_lea.vmem %s2000_s6, 1024  ;;  %s1779_s10 = smov [#allocation6]  }
  0x5c   : > { %p1476_p4 = scmp.ne.s32.totalorder %s2000_s6, %s1475_s4  ;;  %s1480_s7 = sshll.u32 %s1779_s10, 4  ;;  %s1481_s7 = int_to_ptr.vmem [resolvable:$false] %s1480_s7 }
  0x5d   : > { %s1482_s21 = scalar_lea.vmem %s1481_s7, 2048  ;;  %p1483_p5 = scmp.lt.s32.totalorder %s2000_s6, %s1481_s7 }
  0x5e   : > { %p1478_p10 = pnand %p1476_p4, %p1462_p9  ;;  %p1484_p7 = scmp.lt.s32.totalorder %s1482_s21, %s1475_s4 }
  0x60   : > { %p1479_p0 = pneg %p1478_p10  ;;  %p1485_p13 = por %p1484_p7, %p1483_p5 }
  0x62   : > { %p1486_p12 = pnand %p1485_p13, %p1479_p0 }
  0x64   : > { %1489 = shalt.err (!%p1486_p12)
}
  0x65   : > { %s2447_s17 = smov 4   ;;  %s2448_s18 = smov 64  }
  0x66   : > { %1267 = dma.hbm_to_vmem [thread:$0]  (!%p1996_p1), %s1990_s28, 1024, %s2000_s6, %s2004_s23, %s2448_s18, %s2448_s18, %s2447_s17  }
  0x67   : > { %s1780_s20 = smov [#allocation12]   ;;  %s2449_s5 = sld [smem:[#allocation38_spill]] }
  0x68   : > { %s267_s1 = sshll.u32 %s1780_s20, 4  ;;  %p2450_p2 = pneg %p1914_p6  ;;  %s268_s1 = int_to_ptr.vmem [resolvable:$true] %s267_s1 }
  0x6d   : > { %s1490_s4 = scalar_lea.hbm %s2449_s5, 1024 }
  0x6e   : > { %p1491_p8 = scmp.ne.s32.totalorder %s2449_s5, %s1490_s4  ;;  %p1497_p5 = scmp.lt.u32.totalorder %s1490_s4, %s2449_s5 }
  0x70   : > { %p1493_p0 = pnand %p1491_p8, %p2450_p2 }
  0x72   : > { %p1494_p3 = pneg %p1493_p0 }
  0x74   : > { %p1499_p1 = pnand %p1497_p5, %p1494_p3 }
  0x76   : > { %1502 = shalt.err (!%p1499_p1)
}
  0x77   : > { %s1503_s28 = scalar_lea.vmem %s268_s1, 1024  ;;  %p2451_p11 = pmov %p2450_p2 }
  0x78   : > { %p1504_p9 = scmp.ne.s32.totalorder %s268_s1, %s1503_s28  ;;  %p1511_p7 = scmp.lt.s32.totalorder %s268_s1, %s268_s1 }
  0x79   : > { %p1512_p13 = scmp.lt.s32.totalorder %s1503_s28, %s1503_s28 }
  0x7a   : > { %p1506_p4 = pnand %p1504_p9, %p2451_p11 }
  0x7b   : > { %p1513_p12 = por %p1512_p13, %p1511_p7 }
  0x7c   : > { %p1507_p10 = pneg %p1506_p4 }
  0x7e   : > { %p1514_p2 = pnand %p1513_p12, %p1507_p10 }
  0x80   : > { %1517 = shalt.err (!%p1514_p2)
}
  0x81   : > { %1260 = dma.hbm_to_vmem [thread:$0]  (!%p1914_p6), %s2449_s5, 1024, %s268_s1, [#allocation13], %s2448_s18, %s2448_s18, %s2447_s17  }
  0x82   : > { %s51_s19 = sadd.s32 1, %s1754_s9  ;;  %p58_p8 = scmp.ne.s32.totalorder %s1754_s9, %s1750_s8 }
  0x83   : > { %p2452_p0 = scmp.ne.s32.totalorder %s2444_s27, 0  ;;  %p2454_p3 = scmp.eq.s32.totalorder %s1774_s14, 0 }
  0x84   : > { %p64_p1 = scmp.ne.s32.totalorder %s1750_s8, %s1746_s30  ;;  %s284_s20 = sand.u32 1, %s1754_s9  }
  0x85   : > { %s2064_s6 = scalar_select %p2452_p0, %s1754_s9, %s51_s19  }
  0x86   : > { %p60_p5 = por %p2454_p3, %p58_p8  ;;  %s1137_s10 = sshll.u32 %s1770_s13, 3 }
  0x87   : > { %2453 = sst [smem:[#allocation33_spill]] %s2064_s6  ;;  %p2455_p9 = scmp.eq.s32.totalorder %s1900_s15, 0 }
  0x88   : > { %s1080_s7 = sshll.u32 %s284_s20, 4  ;;  %s294_s21 = sadd.s32 %s1766_s12, %s1137_s10 }
  0x89   : > { %p2074_p11 = por %p2455_p9, %p64_p1  ;;  %s1083_s11 = sshll.u32 %s294_s21, 6 }
  0x8a   : > { %s2457_s0 = sld [smem:[#allocation34_spill]]  ;;  %s288_s30 = scalar_lea.vmem [#allocation3], %s1080_s7 }
  0x8b   : > { %s297_s27 = sshll.u32 %s288_s30, 4  ;;  %p2458_p6 = scmp.lt.s32.totalorder %s1774_s14, 4  ;;  %s2084_s27 = int_to_ptr.vmem [resolvable:$true] %s297_s27 }
  0x8c   : > { %s2092_s19 = scalar_lea.sflag [#allocation4], %s284_s20 }
  0x8d   : > { %p2088_p4 = pnand %p2458_p6, %p60_p5 }
  0x8f   : > { %p1520_p7 = pneg %p2088_p4 }
  0x90   : > { %s2082_s29 = scalar_lea.hbm %s2457_s0, %s1083_s11  ;;  %s1523_s11 = scalar_lea.hbm %s2457_s0, 1024 }
  0x91   : > { %s1518_s10 = scalar_lea.hbm %s2082_s29, 256  ;;  %p1524_p2 = scmp.lt.u32.totalorder %s2082_s29, %s2457_s0 }
  0x92   : > { %p1519_p10 = scmp.ne.s32.totalorder %s2082_s29, %s1518_s10  ;;  %p1525_p8 = scmp.lt.u32.totalorder %s1523_s11, %s1518_s10 }
  0x93   : > { %p1527_p3 = scmp.lt.u32.totalorder %s1518_s10, %s2082_s29 }
  0x94   : > { %p1521_p13 = pnand %p1520_p7, %p1519_p10  ;;  %p1526_p0 = por %p1525_p8, %p1524_p2 }
  0x96   : > { %p1522_p12 = pneg %p1521_p13  ;;  %p1528_p5 = por %p1527_p3, %p1526_p0 }
  0x98   : > { %p1529_p1 = pnand %p1528_p5, %p1522_p12 }
  0x9a   : > { %1532 = shalt.err (!%p1529_p1)
}
  0x9b   : > { %s1533_s20 = scalar_lea.vmem %s2084_s27, 256  ;;  %s1781_s30 = smov [#allocation3]  }
  0x9c   : > { %p1534_p9 = scmp.ne.s32.totalorder %s2084_s27, %s1533_s20  ;;  %s1538_s7 = sshll.u32 %s1781_s30, 4  ;;  %s1539_s7 = int_to_ptr.vmem [resolvable:$false] %s1538_s7 }
  0x9d   : > { %s1540_s21 = scalar_lea.vmem %s1539_s7, 512  ;;  %p1541_p13 = scmp.lt.s32.totalorder %s2084_s27, %s1539_s7 }
  0x9e   : > { %p1536_p6 = pnand %p1534_p9, %p1520_p7  ;;  %p1542_p2 = scmp.lt.s32.totalorder %s1540_s21, %s1533_s20 }
  0xa0   : > { %p1537_p10 = pneg %p1536_p6  ;;  %p1543_p8 = por %p1542_p2, %p1541_p13 }
  0xa2   : > { %p1544_p0 = pnand %p1543_p8, %p1537_p10 }
  0xa4   : > { %1547 = shalt.err (!%p1544_p0)
}
  0xa5   : > { %s2415_s10 = smov 128   ;;  %s1075_s16 = sadd.s32 4294967294, %s1774_s14  }
  0xa6   : > { %1264 = dma.hbm_to_vmem [thread:$0]  (!%p2088_p4), %s2082_s29, 256, %s2084_s27, %s2092_s19, %s2415_s10, %s2448_s18, %s2447_s17  }
  0xa7   : > { %s103_s11 = sadd.s32 1, %s1730_s26  ;;  %p2460_p7 = scmp.eq.s32.totalorder %s1970_s22, 0 }
  0xa8   : > { %p110_p12 = scmp.ne.s32.totalorder %s1730_s26, %s1726_s25  ;;  %p116_p3 = scmp.ne.s32.totalorder %s1726_s25, %s1722_s24 }
  0xa9   : > { %s2128_s1 = scalar_select %p2460_p7, %s1730_s26, %s103_s11  }
  0xaa   : > { %p235_p5 = scmp.eq.s32.totalorder %s1075_s16, 3  ;;  %s330_s28 = sand.u32 1, %s1730_s26  }
  0xab   : > { %p2461_p1 = scmp.eq.s32.totalorder %s1774_s14, 0  ;;  %p2462_p6 = scmp.eq.s32.totalorder %s1900_s15, 0 }
  0xac   : > { %p2464_p13 = scmp.eq.s32.totalorder %s1900_s15, 3  ;;  %p2149_p4 = por %p235_p5, %p116_p3 }
  0xad   : > { %p112_p9 = por %p110_p12, %p2461_p1  ;;  %p2139_p10 = por %p116_p3, %p2462_p6 }
  0xae   : > { %p2145_p2 = por %p2464_p13, %p110_p12  ;;  %s1087_s27 = sshll.u32 %s330_s28, 5 }
  0xaf   : > { %s2463_s20 = scalar_select %p2139_p10, 1, 0 }
  0xb0   : > { %s2465_s29 = scalar_select %p2145_p2, 1, 0 }
  0xb1   : > { %s2466_s22 = scalar_select %p2149_p4, 1, 0 }
  0xb2   : > { %s1139_s19 = sshll.u32 %s1770_s13, 9  ;;  %s2467_s2 = sld [smem:[#allocation36_spill]] }
  0xb3   : > { %s332_s16 = scalar_lea.vmem [#allocation8], %s1087_s27  ;;  %p2468_p8 = scmp.lt.s32.totalorder %s1774_s14, 4 }
  0xb4   : > { %s339_s11 = sshll.u32 %s332_s16, 4  ;;  %s2167_s0 = sshll.u32 %s330_s28, 4  ;;  %s2165_s11 = int_to_ptr.vmem [resolvable:$true] %s339_s11 }
  0xb5   : > { %p2161_p0 = pnand %p2468_p8, %p112_p9 }
  0xb7   : > { %p1550_p12 = pneg %p2161_p0 }
  0xb8   : > { %s2157_s21 = scalar_lea.hbm %s2467_s2, %s1139_s19  ;;  %s1553_s7 = scalar_lea.hbm %s2467_s2, 1024 }
  0xb9   : > { %s1548_s30 = scalar_lea.hbm %s2157_s21, 512  ;;  %p1554_p1 = scmp.lt.u32.totalorder %s2157_s21, %s2467_s2 }
  0xba   : > { %p1549_p7 = scmp.ne.s32.totalorder %s2157_s21, %s1548_s30  ;;  %p1555_p9 = scmp.lt.u32.totalorder %s1553_s7, %s1548_s30 }
  0xbb   : > { %p1557_p13 = scmp.lt.u32.totalorder %s1548_s30, %s2157_s21 }
  0xbc   : > { %p1551_p3 = pnand %p1550_p12, %p1549_p7  ;;  %p1556_p6 = por %p1555_p9, %p1554_p1 }
  0xbe   : > { %p1552_p5 = pneg %p1551_p3  ;;  %p1558_p8 = por %p1557_p13, %p1556_p6 }
  0xc0   : > { %p1559_p4 = pnand %p1558_p8, %p1552_p5 }
  0xc2   : > { %1562 = shalt.err (!%p1559_p4)
}
  0xc3   : > { %s1563_s28 = scalar_lea.vmem %s2165_s11, 512  ;;  %s1783_s27 = smov [#allocation8]  }
  0xc4   : > { %p1564_p7 = scmp.ne.s32.totalorder %s2165_s11, %s1563_s28  ;;  %s1568_s19 = sshll.u32 %s1783_s27, 4  ;;  %s1569_s19 = int_to_ptr.vmem [resolvable:$false] %s1568_s19 }
  0xc5   : > { %s1570_s5 = scalar_lea.vmem %s1569_s19, 1024  ;;  %p1571_p10 = scmp.lt.s32.totalorder %s2165_s11, %s1569_s19 }
  0xc6   : > { %p1566_p3 = pnand %p1564_p7, %p1550_p12  ;;  %p1572_p1 = scmp.lt.s32.totalorder %s1570_s5, %s1563_s28 }
  0xc8   : > { %p1567_p2 = pneg %p1566_p3  ;;  %p1573_p9 = por %p1572_p1, %p1571_p10 }
  0xca   : > { %p1574_p6 = pnand %p1573_p9, %p1567_p2 }
  0xcc   : > { %1577 = shalt.err (!%p1574_p6)
}
  0xcd   : > { %s1784_s30 = smov 8   ;;  %s2470_s7 = smov 128  }
  0xce   : > { %1270 = dma.hbm_to_vmem [thread:$0]  (!%p2161_p0), %s2157_s21, 512, %s2165_s11, %s2004_s23, %s2470_s7, %s2470_s7, %s1784_s30  }
  0xcf   : > { %s1140_s16 = sshll.u32 %s1770_s13, 8  ;;  %s353_s5 = scalar_lea.vmem [#allocation9], %s2167_s0 }
  0xd0   : > { %s2201_s28 = scalar_lea.hbm %s2391_s3, %s1140_s16  ;;  %s360_s2 = sshll.u32 %s353_s5, 4  ;;  %s2204_s2 = int_to_ptr.vmem [resolvable:$true] %s360_s2 }
  0xd1   : > { %s2471_s12 = sand.u32 1, %s1774_s14   ;;  %s1578_s9 = scalar_lea.hbm %s2201_s28, 256 }
  0xd2   : > { %s2208_s6 = scalar_lea.sflag [#allocation10], %s2471_s12  ;;  %p1579_p10 = scmp.ne.s32.totalorder %s2201_s28, %s1578_s9 }
  0xd3   : > { %s1583_s11 = scalar_lea.hbm %s2391_s3, 512  ;;  %p1584_p5 = scmp.lt.u32.totalorder %s2201_s28, %s2391_s3 }
  0xd4   : > { %p1581_p2 = pnand %p1579_p10, %p1550_p12  ;;  %p1585_p13 = scmp.lt.u32.totalorder %s1583_s11, %s1578_s9 }
  0xd5   : > { %p1587_p7 = scmp.lt.u32.totalorder %s1578_s9, %s2201_s28 }
  0xd6   : > { %p1582_p4 = pneg %p1581_p2  ;;  %p1586_p8 = por %p1585_p13, %p1584_p5 }
  0xd8   : > { %p1588_p3 = por %p1587_p7, %p1586_p8 }
  0xda   : > { %p1589_p1 = pnand %p1588_p3, %p1582_p4 }
  0xdc   : > { %1592 = shalt.err (!%p1589_p1)
}
  0xdd   : > { %s1593_s0 = scalar_lea.vmem %s2204_s2, 256  ;;  %s1785_s12 = smov [#allocation9]  }
  0xde   : > { %p1594_p9 = scmp.ne.s32.totalorder %s2204_s2, %s1593_s0  ;;  %s1598_s16 = sshll.u32 %s1785_s12, 4  ;;  %s1599_s16 = int_to_ptr.vmem [resolvable:$false] %s1598_s16 }
  0xdf   : > { %s1600_s27 = scalar_lea.vmem %s1599_s16, 512  ;;  %p1601_p2 = scmp.lt.s32.totalorder %s2204_s2, %s1599_s16 }
  0xe0   : > { %p1596_p6 = pnand %p1594_p9, %p1550_p12  ;;  %p1602_p5 = scmp.lt.s32.totalorder %s1600_s27, %s1593_s0 }
  0xe2   : > { %p1597_p10 = pneg %p1596_p6  ;;  %p1603_p13 = por %p1602_p5, %p1601_p2 }
  0xe4   : > { %p1604_p8 = pnand %p1603_p13, %p1597_p10 }
  0xe6   : > { %1607 = shalt.err (!%p1604_p8)
}
  0xe7   : > { %1273 = dma.hbm_to_vmem [thread:$0]  (!%p2161_p0), %s2201_s28, 256, %s2204_s2, %s2208_s6, %s2448_s18, %s2448_s18, %s2447_s17  }
  0xe8   : > { %s2472_s9 = sld [smem:[#allocation28_spill]] }
  0xee   : > { %p2473_p12 = scmp.ne.s32.totalorder %s2472_s9, 0 }
  0xef   : > { %s374_s19 = sand.u32 (!%p2473_p12), 1, %s1750_s8  }
  0xf0   : > { %372 = sbr.rel (%p2473_p12) target bundleno = 797 (0x31d), region = 48  ;;  %s2240_s5 = sshll.u32 (!%p2473_p12), %s374_s19, 4 }
  0xf1   : > { %s375_s23 = scalar_lea.sflag (!%p2473_p12), [#allocation4], %s374_s19  ;;  %s378_s21 = scalar_lea.vmem (!%p2473_p12), [#allocation3], %s2240_s5 }
  0xf7   : > { %1693 = dma.done.wait (%p2074_p11), %s375_s23, 256  }
  0xf8   : > { %1695 = vsyncadd (%p2074_p11), %s375_s23, 4294967040  ;;  %s2474_s10 = sld [smem:[#allocation22_spill]]  ;;  %s2475_s11 = sld [smem:[#allocation32_spill]] }
  0xf9   : > { %s383_s2 = sand.u32 1, %s1900_s15  }
  0xfa   : > { %s384_s6 = scalar_lea.sflag [#allocation7], %s383_s2 }
  0xfe   : > { %s385_s17 = sand.u32 1, %s2474_s10   ;;  %p2476_p0 = scmp.ne.s32.totalorder %s2475_s11, 0 }
  0xff   : > { %s1095_s18 = sshll.u32 %s385_s17, 6 }
 0x100   : > { %s2249_s28 = scalar_lea.vmem [#allocation6], %s1095_s18 }
 0x101   : > { %1697 = dma.done.wait (%p2476_p0), %s384_s6, 1024  }
 0x102   : > { %1699 = vsyncadd (%p2476_p0), %s384_s6, 4294966272  ;;  %s2256_s30 = sand.u32 1, %s1726_s25   ;;  %p2477_p11 = scmp.ne.s32.totalorder %s2463_s20, 0 }
 0x103   : > { %s1096_s4 = sshll.u32 %s2256_s30, 5 }
 0x104   : > { %s396_s7 = scalar_lea.vmem [#allocation8], %s1096_s4 }
 0x105   : > { %1701 = dma.done.wait (%p2477_p11), %s384_s6, 512  }
 0x106   : > { %1703 = vsyncadd (%p2477_p11), %s384_s6, 4294966784  ;;  %s1097_s0 = sshll.u32 %s2256_s30, 4  ;;  %s402_s12 = scalar_lea.sflag [#allocation10], %s383_s2 }
 0x107   : > { %s2264_s16 = scalar_lea.vmem [#allocation9], %s1097_s0 }
 0x108   : > { %1705 = dma.done.wait (%p2477_p11), %s402_s12, 256  }
 0x109   : > { %1707 = vsyncadd (%p2477_p11), %s402_s12, 4294967040  ;;  %p2478_p4 = scmp.eq.s32.totalorder %s1900_s15, 0 }
 0x10b   : > { %1709 = dma.done.wait (%p2478_p4), [#allocation10], 1024   ;;  %p2479_p7 = pmov %p2478_p4 }
 0x10c   : > { %p2480_p3 = pmov %p2478_p4 }
 0x10d   : > { %1711 = vsyncadd (%p2479_p7), [#allocation10], 4294966272 }
 0x10e   : > { %1713 = dma.done.wait (%p2480_p3), [#allocation13], 1024   ;;  %p2481_p1 = pmov %p2480_p3 }
 0x10f   : > { %s2278_s27 = scalar_lea.vmem [#allocation14], %s1096_s4  ;;  %s2482_s9 = sld [smem:[#allocation25_spill]] }
 0x110   : > { %1715 = vsyncadd (%p2481_p1), [#allocation13], 4294966272 }
 0x115   : > { %p1101_p9 = scmp.ne.s32.totalorder %s2482_s9, 0 }
 0x116   : > { %v469_v0 = vld [vmem:[%s396_s7] sm:$0xff] (!%p1101_p9)  ;;  %v470_v1 = vld [vmem:[%s396_s7 + $0x8] sm:$0xff] (!%p1101_p9)  ;;  %v471_v2 = vld [vmem:[%s396_s7 + $0x10] sm:$0xff] (!%p1101_p9) }
 0x117   : > { %468 = sbr.rel (%p1101_p9) target bundleno = 286 (0x11e), region = 76  ;;  %473 = vst [vmem:[#allocation2] sm:$0xff] (!%p1101_p9), %v469_v0  ;;  %474 = vst [vmem:[#allocation2 + $0x8] sm:$0xff] (!%p1101_p9), %v470_v1  ;;  %v472_v3 = vld [vmem:[%s396_s7 + $0x18] sm:$0xff] (!%p1101_p9) }
 0x118   : > { %475 = vst [vmem:[#allocation2 + $0x10] sm:$0xff] (!%p1101_p9), %v471_v2  ;;  %476 = vst [vmem:[#allocation2 + $0x18] sm:$0xff] (!%p1101_p9), %v472_v3 }
 0x11e PF: > { %v1404_v4 = vld [vmem:[%s2249_s28] sm:$0xff]   ;;  %v1405_v5 = vld [vmem:[%s2249_s28 + $0x8] sm:$0xff]   ;;  %v1406_v6 = vld [vmem:[%s2249_s28 + $0x10] sm:$0xff]   ;;  %s2483_s15 = sld [smem:[#allocation25_spill]] }
 0x11f   : > { %1172 = vmatprep.subr.bf16.mxu0 %v1404_v4  ;;  %v1407_v7 = vld [vmem:[%s2249_s28 + $0x18] sm:$0xff]   ;;  %v1412_v8 = vld [vmem:[%s378_s21] sm:$0xff]   ;;  %v1409_v10 = vld [vmem:[%s2249_s28 + $0x28] sm:$0xff]  }
 0x120   : > { %1173 = vmatpush3.bf16.msra.mxu0 %v1404_v4  ;;  %1188 = vmatprep.mubr.bf16.mxu0 %v1412_v8  ;;  %v1408_v9 = vld [vmem:[%s2249_s28 + $0x20] sm:$0xff]   ;;  %v1410_v11 = vld [vmem:[%s2249_s28 + $0x30] sm:$0xff]   ;;  %v1411_v12 = vld [vmem:[%s2249_s28 + $0x38] sm:$0xff]  }
 0x121   : > { %1174 = vmatprep.subr.bf16.mxu0 %v1405_v5  ;;  %v1413_v13 = vld [vmem:[%s378_s21 + $0x8] sm:$0xff]   ;;  %v479_v14 = vld [vmem:[#allocation2 + $0x10] sm:$0xff]  ;;  %v477_v15 = vld [vmem:[#allocation2] sm:$0xff] }
 0x122   : > { %v480_v17 = vld [vmem:[#allocation2 + $0x18] sm:$0xff]  ;;  %v478_v20 = vld [vmem:[#allocation2 + $0x8] sm:$0xff] }
 0x124   : > { %1175 = vmatpush3.bf16.msra.mxu0 %v1405_v5  ;;  %p1112_p6 = scmp.ne.s32.totalorder %s2483_s15, 1 }
 0x125   : > { %1176 = vmatprep.subr.bf16.mxu0 %v1406_v6  ;;  %v1414_v26 = vld [vmem:[#allocation12] sm:$0xff] (!%p1112_p6)   ;;  %v1416_v28 = vld [vmem:[#allocation12 + $0x8] sm:$0xff] (!%p1112_p6)   ;;  %v1418_v30 = vld [vmem:[#allocation12 + $0x10] sm:$0xff] (!%p1112_p6)   ;;  %s2484_s5 = sld [smem:[#allocation39_spill]] (!%p1112_p6) }
 0x126   : > { %v1415_v27 = vld [vmem:[#allocation11] sm:$0xff] (!%p1112_p6)   ;;  %1192 = vmatprep.subr.bf16.mxu1 (!%p1112_p6), %v1414_v26  ;;  %v1417_v29 = vld [vmem:[#allocation11 + $0x8] sm:$0xff] (!%p1112_p6)   ;;  %v1419_v31 = vld [vmem:[#allocation11 + $0x10] sm:$0xff] (!%p1112_p6)  }
 0x127   : > { %1193 = vmatpush3.bf16.msra.mxu1 (!%p1112_p6), %v1414_v26  ;;  %v1420_v32 = vld [vmem:[#allocation12 + $0x18] sm:$0xff] (!%p1112_p6)   ;;  %v1422_v34 = vld [vmem:[#allocation12 + $0x20] sm:$0xff] (!%p1112_p6)   ;;  %v1424_v36 = vld [vmem:[#allocation12 + $0x28] sm:$0xff] (!%p1112_p6)  }
 0x128   : > { %1177 = vmatpush3.bf16.msra.mxu0 %v1406_v6  ;;  %1194 = vmatprep.subr.bf16.mxu1 (!%p1112_p6), %v1416_v28  ;;  %v1421_v33 = vld [vmem:[#allocation11 + $0x18] sm:$0xff] (!%p1112_p6)   ;;  %v1423_v35 = vld [vmem:[#allocation11 + $0x20] sm:$0xff] (!%p1112_p6)   ;;  %v1425_v39 = vld [vmem:[#allocation11 + $0x28] sm:$0xff] (!%p1112_p6)  }
 0x129   : > { %1178 = vmatprep.subr.bf16.mxu0 %v1407_v7  ;;  %v1430_v41 = vld [vmem:[%s2264_s16] sm:$0xff] (!%p1112_p6)   ;;  %v1428_v44 = vld [vmem:[#allocation12 + $0x38] sm:$0xff] (!%p1112_p6)  }
 0x12a   : > { %v1426_v42 = vld [vmem:[#allocation12 + $0x30] sm:$0xff] (!%p1112_p6)   ;;  %v1429_v45 = vld [vmem:[#allocation11 + $0x38] sm:$0xff] (!%p1112_p6)  }
 0x12b   : > { %1195 = vmatpush3.bf16.msra.mxu1 (!%p1112_p6), %v1416_v28  ;;  %v1427_v43 = vld [vmem:[#allocation11 + $0x30] sm:$0xff] (!%p1112_p6)   ;;  %v1431_v49 = vld [vmem:[%s2264_s16 + $0x8] sm:$0xff] (!%p1112_p6)   ;;  %v1131_v52 = vld [vmem:[%s2484_s5] ss:$0 sm:$0xff] (!%p1112_p6) }
 0x12c   : > { %1179 = vmatpush3.bf16.msra.mxu0 %v1407_v7  ;;  %1196 = vmatprep.subr.bf16.mxu1 (!%p1112_p6), %v1418_v30 }
 0x12d   : > { %1180 = vmatprep.subr.bf16.mxu0 %v1408_v9 }
 0x12f   : > { %1197 = vmatpush3.bf16.msra.mxu1 (!%p1112_p6), %v1418_v30 }
 0x130   : > { %1181 = vmatpush3.bf16.msra.mxu0 %v1408_v9  ;;  %1198 = vmatprep.subr.bf16.mxu1 (!%p1112_p6), %v1420_v32 }
 0x131   : > { %1182 = vmatprep.subr.bf16.mxu0 %v1409_v10 }
 0x133   : > { %1199 = vmatpush3.bf16.msra.mxu1 (!%p1112_p6), %v1420_v32 }
 0x134   : > { %1183 = vmatpush3.bf16.msra.mxu0 %v1409_v10  ;;  %1200 = vmatprep.subr.bf16.mxu1 (!%p1112_p6), %v1422_v34 }
 0x135   : > { %1184 = vmatprep.subr.bf16.mxu0 %v1410_v11 }
 0x137   : > { %1201 = vmatpush3.bf16.msra.mxu1 (!%p1112_p6), %v1422_v34 }
 0x138   : > { %1185 = vmatpush3.bf16.msra.mxu0 %v1410_v11  ;;  %1202 = vmatprep.subr.bf16.mxu1 (!%p1112_p6), %v1424_v36 }
 0x139   : > { %1186 = vmatprep.subr.bf16.mxu0 %v1411_v12 }
 0x13b   : > { %1203 = vmatpush3.bf16.msra.mxu1 (!%p1112_p6), %v1424_v36 }
 0x13c   : > { %1187 = vmatpush3.bf16.msra.mxu0 %v1411_v12  ;;  %1204 = vmatprep.subr.bf16.mxu1 (!%p1112_p6), %v1426_v42 }
 0x13d   : > { %1212 = vmatprep.subr.bf16.mxu0 (!%p1112_p6), %v1415_v27 }
 0x13f   : > { %1189 = vmatmul.mubr.bf16.vlgmr.msra.gmra.mrb[0].mxu0 %v1413_v13  ;;  %1205 = vmatpush3.bf16.msra.mxu1 (!%p1112_p6), %v1426_v42 }
 0x140   : > { %1213 = vmatpush3.bf16.msra.mxu0 (!%p1112_p6), %v1415_v27  ;;  %1228 = vmatprep.mubr.bf16.mxu0 (!%p1112_p6), %v1430_v41 }
 0x141   : > { %1214 = vmatprep.subr.bf16.mxu0 (!%p1112_p6), %v1417_v29  ;;  %1206 = vmatprep.subr.bf16.mxu1 (!%p1112_p6), %v1428_v44 }
 0x143   : > { %1207 = vmatpush3.bf16.msra.mxu1 (!%p1112_p6), %v1428_v44 }
 0x144   : > { %1215 = vmatpush3.bf16.msra.mxu0 (!%p1112_p6), %v1417_v29 }
 0x145   : > { %1216 = vmatprep.subr.bf16.mxu0 (!%p1112_p6), %v1419_v31 }
 0x148   : > { %1217 = vmatpush3.bf16.msra.mxu0 (!%p1112_p6), %v1419_v31 }
 0x149   : > { %1218 = vmatprep.subr.bf16.mxu0 (!%p1112_p6), %v1421_v33 }
 0x14c   : > { %1219 = vmatpush3.bf16.msra.mxu0 (!%p1112_p6), %v1421_v33 }
 0x14d   : > { %1220 = vmatprep.subr.bf16.mxu0 (!%p1112_p6), %v1423_v35 }
 0x150   : > { %1221 = vmatpush3.bf16.msra.mxu0 (!%p1112_p6), %v1423_v35 }
 0x151   : > { %1222 = vmatprep.subr.bf16.mxu0 (!%p1112_p6), %v1425_v39 }
 0x154   : > { %1223 = vmatpush3.bf16.msra.mxu0 (!%p1112_p6), %v1425_v39 }
 0x155   : > { %1224 = vmatprep.subr.bf16.mxu0 (!%p1112_p6), %v1427_v43 }
 0x158   : > { %1225 = vmatpush3.bf16.msra.mxu0 (!%p1112_p6), %v1427_v43 }
 0x159   : > { %1226 = vmatprep.subr.bf16.mxu0 (!%p1112_p6), %v1429_v45 }
 0x15c   : > { %1227 = vmatpush3.bf16.msra.mxu0 (!%p1112_p6), %v1429_v45 }
 0x212   : > { %v1190_v16 = vpop.f32.mrb[0].mxu0  ;;  %621 = sbr.rel (%p1112_p6) target bundleno = 769 (0x301), region = 80 }
 0x213   : > { %v612_v18 = vadd.f32 %v1190_v16, %v479_v14  ;;  %v595_v19 = vpop.f32.mrb[1].mxu0 }
 0x214   : > { %v610_v21 = vadd.f32 %v595_v19, %v477_v15  ;;  %v1191_v22 = vpop.f32.mrb[2].mxu0 }
 0x215   : > { %616 = vst [vmem:[#allocation2 + $0x10] sm:$0xff] %v612_v18  ;;  %v613_v23 = vadd.f32 %v1191_v22, %v480_v17  ;;  %v598_v24 = vpop.f32.mrb[3].mxu0  ;;  %1229 = vmatmul.mubr.bf16.vlgmr.msra.gmra.mrb[0].mxu0 (!%p1112_p6), %v1431_v49 }
 0x216   : > { %614 = vst [vmem:[#allocation2] sm:$0xff] %v610_v21  ;;  %v611_v25 = vadd.f32 %v598_v24, %v478_v20 }
 0x217   : > { %617 = vst [vmem:[#allocation2 + $0x18] sm:$0xff] %v613_v23 }
 0x218   : > { %615 = vst [vmem:[#allocation2 + $0x8] sm:$0xff] %v611_v25 }
 0x21c   : > { %v644_v46 = vld [vmem:[#allocation2 + $0x10] sm:$0xff] }
 0x21d   : > { %v642_v37 = vld [vmem:[#allocation2] sm:$0xff] }
 0x21e   : > { %v645_v47 = vld [vmem:[#allocation2 + $0x18] sm:$0xff] }
 0x21f   : > { %v643_v38 = vld [vmem:[#allocation2 + $0x8] sm:$0xff]  ;;  %v647_v48 = vpack.c.bf16 %v645_v47, %v644_v46 }
 0x220   : > { %v646_v40 = vpack.c.bf16 %v643_v38, %v642_v37 }
 0x222   : > { %1208 = vmatprep.mubr.bf16.mxu1 %v646_v40 }
 0x223   : > { %1209 = vmatmul.mubr.bf16.vlgmr.msra.gmra.mrb[0].mxu1 %v647_v48 }
 0x2e8   : > { %v1230_v51 = vpop.f32.mrb[0].mxu0 }
 0x2e9   : > { %v855_v55 = vpop.f32.mrb[1].mxu0 }
 0x2ea   : > { %v1231_v58 = vpop.f32.mrb[2].mxu0 }
 0x2eb   : > { %v858_v62 = vpop.f32.mrb[3].mxu0 }
 0x2f6   : > { %v1210_v50 = vpop.f32.mrb[0].mxu1 }
 0x2f7   : > { %v746_v53 = vpop.f32.mrb[1].mxu1  ;;  %v864_v54 = vadd.f32 %v1230_v51, %v1210_v50 }
 0x2f8   : > { %v1211_v56 = vpop.f32.mrb[2].mxu1  ;;  %v856_v57 = vadd.f32 %v855_v55, %v746_v53 }
 0x2f9   : > { %v749_v59 = vpop.f32.mrb[3].mxu1  ;;  %v879_v60 = vadd.f32 %v1131_v52, %v864_v54  ;;  %v867_v61 = vadd.f32 %v1231_v58, %v1211_v56 }
 0x2fa   : > { %v877_v63 = vadd.f32 %v1131_v52, %v856_v57  ;;  %v859_v0 = vadd.f32 %v858_v62, %v749_v59 }
 0x2fb   : > { %v883_v1 = vmax.f32 %v879_v60, 0.0  ;;  %v880_v2 = vadd.f32 %v1131_v52, %v867_v61 }
 0x2fc   : > { %v881_v3 = vmax.f32 %v877_v63, 0.0  ;;  %v878_v4 = vadd.f32 %v1131_v52, %v859_v0 }
 0x2fd   : > { %887 = vst [vmem:[%s2278_s27 + $0x10] sm:$0xff] %v883_v1  ;;  %v884_v5 = vmax.f32 %v880_v2, 0.0 }
 0x2fe   : > { %885 = vst [vmem:[%s2278_s27] sm:$0xff] %v881_v3  ;;  %v882_v6 = vmax.f32 %v878_v4, 0.0 }
 0x2ff   : > { %888 = vst [vmem:[%s2278_s27 + $0x18] sm:$0xff] %v884_v5 }
 0x300   : > { %886 = vst [vmem:[%s2278_s27 + $0x8] sm:$0xff] %v882_v6 }
 0x301 PF: > { %s2485_s23 = sld [smem:[#allocation26_spill]]  ;;  %s2486_s2 = sld [smem:[#allocation40_spill]] }
 0x302   : > { %s903_s18 = sshll.u32 %s2278_s27, 4  ;;  %s890_s6 = scalar_lea.sflag [#allocation5], %s2256_s30  ;;  %s2310_s18 = int_to_ptr.vmem [resolvable:$true] %s903_s18 }
 0x303   : > { %s1608_s28 = scalar_lea.vmem %s2310_s18, 512  ;;  %p2487_p2 = scmp.ne.s32.totalorder %s2465_s29, 0 }
 0x304   : > { %p1609_p10 = scmp.ne.s32.totalorder %s2310_s18, %s1608_s28  ;;  %s1786_s4 = smov [#allocation14]  }
 0x305   : > { %s1612_s7 = sshll.u32 %s1786_s4, 4  ;;  %s1613_s7 = int_to_ptr.vmem [resolvable:$false] %s1612_s7 }
 0x306   : > { %p1610_p5 = pnand %p1609_p10, %p2487_p2  ;;  %s1614_s0 = scalar_lea.vmem %s1613_s7, 1024 }
 0x307   : > { %s1141_s21 = sshll.u32 %s2485_s23, 9  ;;  %p1615_p8 = scmp.lt.s32.totalorder %s2310_s18, %s1613_s7 }
 0x308   : > { %s2307_s17 = scalar_lea.hbm %s2486_s2, %s1141_s21  ;;  %p1611_p13 = pneg %p1610_p5 }
 0x309   : > { %p1616_p12 = scmp.lt.s32.totalorder %s1614_s0, %s1608_s28 }
 0x30b   : > { %p1617_p0 = por %p1616_p12, %p1615_p8 }
 0x30d   : > { %p1618_p11 = pnand %p1617_p0, %p1611_p13 }
 0x30f   : > { %1621 = shalt.err (!%p1618_p11)
}
 0x310   : > { %s1622_s12 = scalar_lea.hbm %s2307_s17, 512  ;;  %s1626_s9 = scalar_lea.hbm %s2486_s2, 1024 }
 0x311   : > { %p1623_p4 = scmp.ne.s32.totalorder %s2307_s17, %s1622_s12  ;;  %p1627_p1 = scmp.lt.u32.totalorder %s2307_s17, %s2486_s2 }
 0x312   : > { %p1628_p9 = scmp.lt.u32.totalorder %s1626_s9, %s1622_s12  ;;  %p1630_p10 = scmp.lt.u32.totalorder %s1622_s12, %s2307_s17 }
 0x313   : > { %p1624_p7 = pnand %p1623_p4, %p2487_p2 }
 0x314   : > { %p1629_p6 = por %p1628_p9, %p1627_p1 }
 0x315   : > { %p1625_p3 = pneg %p1624_p7 }
 0x316   : > { %p1631_p5 = por %p1630_p10, %p1629_p6 }
 0x318   : > { %p1632_p13 = pnand %p1631_p5, %p1625_p3 }
 0x31a   : > { %1635 = shalt.err (!%p1632_p13)
}
 0x31b   : > { %s1787_s19 = smov 128   ;;  %s1788_s5 = smov 8  }
 0x31c   : > { %1252 = dma.vmem_to_hbm [thread:$0]  (%p2487_p2), %s2310_s18, 512, %s2307_s17, %s890_s6, %s1787_s19, %s1787_s19, %s1788_s5  }
 0x31d PF: > { %p1283_p8 = scmp.ge.s32.totalorder %s1774_s14, 2  ;;  %s918_s23 = sand.u32 1, %s1722_s24  }
 0x31e   : > { %p2488_p12 = scmp.ne.s32.totalorder %s2466_s22, 0  ;;  %s919_s21 = scalar_lea.sflag [#allocation5], %s918_s23 }
 0x320   : > { %p1275_p0 = pnand %p1283_p8, %p2488_p12 }
 0x322   : > { %1717 = dma.done.wait (!%p1275_p0), %s919_s21, 512  }
 0x323   : > { %1719 = vsyncadd (!%p1275_p0), %s919_s21, 4294966784  ;;  %s30_s14 = sadd.s32 1, %s1774_s14   ;;  %s2490_s27 = sld [smem:[#allocation22_spill]] }
 0x324   : > { %p2341_p11 = scmp.ge.s32.totalorder %s30_s14, 6   ;;  %s2491_s28 = sld [smem:[#allocation23_spill]] }
 0x325   : > { %s2492_s29 = sld [smem:[#allocation31_spill]]  ;;  %s2493_s11 = sld [smem:[#allocation24_spill]] }
 0x326   : > { %s2494_s9 = sld [smem:[#allocation33_spill]]  ;;  %s2495_s22 = sld [smem:[#allocation27_spill]] }
 0x327   : > { %s2496_s12 = sld [smem:[#allocation29_spill]]  ;;  %s2497_s17 = sld [smem:[#allocation30_spill]] }
 0x328   : > { %s2499_s24 = smov %s1726_s25  ;;  %s2500_s25 = smov %s1730_s26 }
 0x329   : > { %s2501_s26 = smov %s2128_s1  ;;  %s2502_s30 = smov %s1750_s8 }
 0x32a   :  { %29 = sbr.rel (!%p2341_p11) target bundleno = 23 (0x17), region = 146 }
 0x32b   : > { %s2503_s8 = smov %s2493_s11  ;;  %s2505_s11 = smov %s1770_s13 }
 0x32c   : > { %s2504_s10 = smov %s2495_s22 }
 0x32d   : > { %s2506_s13 = smov %s2497_s17 }
 0x331   :  { %924 = vsyncpa [#allocation4], 1 }
 0x332   :  { %926 = vsyncpa [#allocation4 + $0x1], 1 }
 0x333   :  { %927 = vsyncpa [#allocation7], 1 }
 0x334   :  { %929 = vsyncpa [#allocation7 + $0x1], 1 }
 0x335   :  { %930 = vsyncpa [#allocation10], 1 }
 0x336   :  { %932 = vsyncpa [#allocation10 + $0x1], 1 }
 0x337   :  { %933 = vsyncpa [#allocation13], 1 }
 0x338   :  { %934 = vsyncpa [#allocation5], 1 }
 0x339   :  { %936 = vsyncpa [#allocation5 + $0x1], 1 }

</bundles_post_ra>
